<compile_context>
chip_gen: v7x
topology: tpu7x:2x2x1
jax: 0.10.0
libtpu: 0.0.40
codegen_flags: <defaults>
</compile_context>

<pallas_src>
import functools

import jax
import jax.numpy as jnp
from jax.experimental import pallas as pl
from jax.experimental.pallas import tpu as pltpu

_LANES = 128
_TILE_ROWS = 1024   # rows per grid step; sweep 512 / 1024 / 2048 when tuning


def _round_up(a, b):
    return -(-a // b) * b


def _soft_bce_kernel(x_ref, t_ref, out_ref, *, w_pos, w_neg, use_weight,
                     n_valid, tile_rows, blocks_per_chunk, needs_mask):
    # Zero this chunk's resident (1, 8, 128) partial-sum block once per chunk.
    @pl.when(pl.program_id(1) == 0)
    def _():
        out_ref[...] = jnp.zeros_like(out_ref)

    x = x_ref[...].astype(jnp.float32)      # (tile_rows, 128) logits
    t = t_ref[...].astype(jnp.float32)      # (tile_rows, 128) soft targets

    # Stable binary_cross_entropy_with_logits (reduction='none'):
    #   max(x, 0) - x*t + log(1 + exp(-|x|))
    bce = jnp.maximum(x, 0.0) - x * t + jnp.log1p(jnp.exp(-jnp.abs(x)))

    if use_weight:
        # weight[1]*(t > 0.5) + weight[0]*(t < 0.5); t == 0.5 gets weight 0,
        # exactly matching the PyTorch pos/neg indicator formulation.
        w = (jnp.where(t > 0.5, jnp.float32(w_pos), jnp.float32(0.0))
             + jnp.where(t < 0.5, jnp.float32(w_neg), jnp.float32(0.0)))
        loss = w * bce
    else:
        loss = bce

    if needs_mask:
        # Mask the lane pad and the padded rows of a partial last block via the
        # global flat element index (pure VPU work; only traced when needed).
        block_idx = pl.program_id(0) * blocks_per_chunk + pl.program_id(1)
        row_ids = block_idx * tile_rows + jax.lax.broadcasted_iota(
            jnp.int32, (tile_rows, _LANES), 0)
        lane_ids = jax.lax.broadcasted_iota(jnp.int32, (tile_rows, _LANES), 1)
        gidx = row_ids * _LANES + lane_ids
        loss = jnp.where(gidx < n_valid, loss, 0.0)

    # Fold (tile_rows, 128) -> (8, 128) with lane-wise VPU adds and accumulate
    # into the VMEM-resident output block (written back to HBM once per chunk).
    partial = jnp.sum(loss.reshape(tile_rows // 8, 8, _LANES), axis=0)
    out_ref[...] += partial[None, :, :]


def soft_bce_loss(logit_pixel, truth_pixel, weight=(0.25, 0.75)):
    """Forward pass of SoftBceLoss (weighted BCE-with-logits, mean reduction).

    `weight` is treated as a static Python pair (as in the PyTorch module's
    __init__); pass a falsy value for the unweighted branch.
    """
    assert logit_pixel.shape == truth_pixel.shape
    n = int(logit_pixel.size)
    if n == 0:
        raise ValueError("soft_bce_loss: empty input")

    use_weight = bool(weight)
    w_neg = float(weight[0]) if use_weight else 1.0
    w_pos = float(weight[1]) if use_weight else 1.0

    x = logit_pixel.reshape(-1).astype(jnp.float32)
    t = truth_pixel.reshape(-1).astype(jnp.float32)

    # Only a tiny (<128 element) pad to the next lane multiple, if required.
    lane_pad = (-n) % _LANES
    if lane_pad:
        x = jnp.pad(x, (0, lane_pad))
        t = jnp.pad(t, (0, lane_pad))
    rows = (n + lane_pad) // _LANES

    tile_rows = min(_TILE_ROWS, _round_up(rows, 8))
    total_blocks = -(-rows // tile_rows)

    # Megacore split (v7x: 2 TensorCores): leading "parallel" chunk axis. Only
    # split when the block count divides evenly so no block is fully OOB;
    # harmless (num_chunks == 1) on single-core chips or odd block counts.
    num_chunks = 2 if (total_blocks % 2 == 0 and total_blocks >= 2) else 1
    blocks_per_chunk = total_blocks // num_chunks

    needs_mask = (lane_pad != 0) or (rows % tile_rows != 0)

    x2 = x.reshape(rows, _LANES)
    t2 = t.reshape(rows, _LANES)

    kernel = functools.partial(
        _soft_bce_kernel,
        w_pos=w_pos, w_neg=w_neg, use_weight=use_weight,
        n_valid=n, tile_rows=tile_rows,
        blocks_per_chunk=blocks_per_chunk, needs_mask=needs_mask)

    in_map = lambda c, i: (c * blocks_per_chunk + i, 0)

    partials = pl.pallas_call(
        kernel,
        out_shape=jax.ShapeDtypeStruct((num_chunks, 8, _LANES), jnp.float32),
        grid_spec=pltpu.PrefetchScalarGridSpec(
            num_scalar_prefetch=0,
            grid=(num_chunks, blocks_per_chunk),
            in_specs=[
                pl.BlockSpec((tile_rows, _LANES), in_map),
                pl.BlockSpec((tile_rows, _LANES), in_map),
            ],
            out_specs=pl.BlockSpec((1, 8, _LANES), lambda c, i: (c, 0, 0)),
        ),
        compiler_params=pltpu.CompilerParams(
            dimension_semantics=("parallel", "arbitrary")),
    )(x2, t2)

    # Single cross-lane reduction + mean scale, done once outside the kernel.
    return jnp.sum(partials) * jnp.float32(1.0 / n)


def _reference(logit_pixel, truth_pixel, weight=(0.25, 0.75)):
    """Pure-JAX reference mirroring the PyTorch SoftBceLoss forward."""
    x = logit_pixel.reshape(-1).astype(jnp.float32)
    t = truth_pixel.reshape(-1).astype(jnp.float32)
    bce = jnp.maximum(x, 0.0) - x * t + jnp.log1p(jnp.exp(-jnp.abs(x)))
    if weight:
        pos = (t > 0.5).astype(jnp.float32)
        neg = (t < 0.5).astype(jnp.float32)
        return (weight[1] * pos * bce + weight[0] * neg * bce).mean()
    return bce.mean()


def _check(logit, truth, weight=(0.25, 0.75)):
    got = jax.block_until_ready(soft_bce_loss(logit, truth, weight))
    ref = _reference(logit, truth, weight)
    assert jnp.allclose(got, ref, rtol=2e-5, atol=1e-6), (got, ref)


if __name__ == "__main__":
    key = jax.random.PRNGKey(0)
    k1, k2, k3, k4, k5, k6 = jax.random.split(key, 6)

    # Primary case: per-pixel binary logits + {0,1} truth masks, NCHW.
    logit = jax.random.normal(k1, (2, 4, 16, 16), dtype=jnp.float32)
    truth = (jax.random.uniform(k2, (2, 4, 16, 16)) > 0.5).astype(jnp.float32)
    _check(logit, truth)

    # Ragged size: exercises the lane-pad + in-kernel tail masking path.
    logit2 = jax.random.normal(k3, (2, 3, 15, 17), dtype=jnp.float32)
    truth2 = (jax.random.uniform(k4, (2, 3, 15, 17)) > 0.5).astype(jnp.float32)
    _check(logit2, truth2)

    # Larger case: exercises the 2-chunk "parallel" axis, multi-block inner
    # accumulation, and a partial last block.
    logit3 = jax.random.normal(k5, (4, 8, 128, 127), dtype=jnp.float32)
    truth3 = (jax.random.uniform(k6, (4, 8, 128, 127)) > 0.5).astype(jnp.float32)
    _check(logit3, truth3)

    # Unweighted branch (weight falsy).
    _check(logit, truth, weight=None)

    print("KERNEL_OK")
</pallas_src>

<mosaic_0001>
module attributes {stable_mosaic.version = 11 : i64} {
  func.func @_soft_bce_kernel(%arg0: i32, %arg1: i32, %arg2: memref<16x128xf32, #tpu.memory_space<vmem>>, %arg3: memref<16x128xf32, #tpu.memory_space<vmem>>, %arg4: memref<1x8x128xf32, #tpu.memory_space<vmem>>) attributes {dimension_semantics = [#tpu.dimension_semantics<parallel>, #tpu.dimension_semantics<arbitrary>], iteration_bounds = array<i64: 1, 1>, scalar_prefetch = 0 : i64, scratch_operands = 0 : i64, tpu.core_type = #tpu.core_type<tc>, window_params = [{transform_indices = @transform_0, window_bounds = array<i64: 16, 128>}, {transform_indices = @transform_1, window_bounds = array<i64: 16, 128>}, {transform_indices = @transform_2, window_bounds = array<i64: 1, 8, 128>}]} {
    %c0_i32 = arith.constant 0 : i32
    %0 = arith.cmpi eq, %arg1, %c0_i32 : i32
    %1 = arith.extui %0 : i1 to i32
    %c0_i32_0 = arith.constant 0 : i32
    %2 = arith.cmpi ne, %1, %c0_i32_0 : i32
    scf.if %2 {
      %cst_18 = arith.constant 0.000000e+00 : f32
      %33 = vector.broadcast %cst_18 : f32 to vector<1x8x128xf32>
      %c0_19 = arith.constant 0 : index
      %c0_20 = arith.constant 0 : index
      %c0_21 = arith.constant 0 : index
      %34 = vector.load %arg4[%c0_19, %c0_20, %c0_21] : memref<1x8x128xf32, #tpu.memory_space<vmem>>, vector<1x8x128xf32>
      tpu.vector_store %arg4[%c0_19, %c0_20, %c0_21], %33 {strides = array<i32>} : memref<1x8x128xf32, #tpu.memory_space<vmem>>, vector<1x8x128xf32>,
    } else {
    }
    %c0 = arith.constant 0 : index
    %c0_1 = arith.constant 0 : index
    %3 = vector.load %arg2[%c0, %c0_1] : memref<16x128xf32, #tpu.memory_space<vmem>>, vector<16x128xf32>
    %c0_2 = arith.constant 0 : index
    %c0_3 = arith.constant 0 : index
    %4 = vector.load %arg3[%c0_2, %c0_3] : memref<16x128xf32, #tpu.memory_space<vmem>>, vector<16x128xf32>
    %cst = arith.constant 0.000000e+00 : f32
    %5 = vector.broadcast %cst : f32 to vector<16x128xf32>
    %6 = arith.maximumf %3, %5 : vector<16x128xf32>
    %7 = arith.mulf %3, %4 : vector<16x128xf32>
    %8 = arith.subf %6, %7 : vector<16x128xf32>
    %9 = math.absf %3 : vector<16x128xf32>
    %cst_4 = arith.constant 0.000000e+00 : f32
    %10 = vector.broadcast %cst_4 : f32 to vector<16x128xf32>
    %11 = arith.subf %10, %9 : vector<16x128xf32>
    %12 = math.exp %11 : vector<16x128xf32>
    %13 = math.log1p %12 : vector<16x128xf32>
    %14 = arith.addf %8, %13 : vector<16x128xf32>
    %cst_5 = arith.constant 5.000000e-01 : f32
    %15 = vector.broadcast %cst_5 : f32 to vector<16x128xf32>
    %16 = arith.cmpf ogt, %4, %15 : vector<16x128xf32>
    %cst_6 = arith.constant 7.500000e-01 : f32
    %cst_7 = arith.constant 0.000000e+00 : f32
    %17 = vector.broadcast %cst_6 : f32 to vector<16x128xf32>
    %18 = vector.broadcast %cst_7 : f32 to vector<16x128xf32>
    %19 = arith.select %16, %17, %18 : vector<16x128xi1>, vector<16x128xf32>
    %cst_8 = arith.constant 5.000000e-01 : f32
    %20 = vector.broadcast %cst_8 : f32 to vector<16x128xf32>
    %21 = arith.cmpf olt, %4, %20 : vector<16x128xf32>
    %cst_9 = arith.constant 2.500000e-01 : f32
    %cst_10 = arith.constant 0.000000e+00 : f32
    %22 = vector.broadcast %cst_9 : f32 to vector<16x128xf32>
    %23 = vector.broadcast %cst_10 : f32 to vector<16x128xf32>
    %24 = arith.select %21, %22, %23 : vector<16x128xi1>, vector<16x128xf32>
    %25 = arith.addf %19, %24 : vector<16x128xf32>
    %26 = arith.mulf %25, %14 : vector<16x128xf32>
    %27 = vector.shape_cast %26 : vector<16x128xf32> to vector<2x8x128xf32>
    %cst_11 = arith.constant dense<0.000000e+00> : vector<8x128xf32>
    %28 = vector.multi_reduction <add>, %27, %cst_11 [0] : vector<2x8x128xf32> to vector<8x128xf32>
    %c0_12 = arith.constant 0 : index
    %c0_13 = arith.constant 0 : index
    %c0_14 = arith.constant 0 : index
    %29 = vector.load %arg4[%c0_12, %c0_13, %c0_14] : memref<1x8x128xf32, #tpu.memory_space<vmem>>, vector<1x8x128xf32>
    %30 = vector.shape_cast %28 : vector<8x128xf32> to vector<1x8x128xf32>
    %31 = arith.addf %29, %30 : vector<1x8x128xf32>
    %c0_15 = arith.constant 0 : index
    %c0_16 = arith.constant 0 : index
    %c0_17 = arith.constant 0 : index
    %32 = vector.load %arg4[%c0_15, %c0_16, %c0_17] : memref<1x8x128xf32, #tpu.memory_space<vmem>>, vector<1x8x128xf32>
    tpu.vector_store %arg4[%c0_15, %c0_16, %c0_17], %31 {strides = array<i32>} : memref<1x8x128xf32, #tpu.memory_space<vmem>>, vector<1x8x128xf32>,
    return
  }
  func.func @transform_0(%arg0: i32, %arg1: i32) -> (i32, i32) {
    %c1_i32 = arith.constant 1 : i32
    %0 = arith.muli %arg0, %c1_i32 : i32
    %1 = arith.addi %0, %arg1 : i32
    %c0_i32 = arith.constant 0 : i32
    %c0_i32_0 = arith.constant 0 : i32
    return %1, %c0_i32 : i32, i32
  }
  func.func @transform_1(%arg0: i32, %arg1: i32) -> (i32, i32) {
    %c1_i32 = arith.constant 1 : i32
    %0 = arith.muli %arg0, %c1_i32 : i32
    %1 = arith.addi %0, %arg1 : i32
    %c0_i32 = arith.constant 0 : i32
    %c0_i32_0 = arith.constant 0 : i32
    return %1, %c0_i32 : i32, i32
  }
  func.func @transform_2(%arg0: i32, %arg1: i32) -> (i32, i32, i32) {
    %c0_i32 = arith.constant 0 : i32
    %c0_i32_0 = arith.constant 0 : i32
    %c0_i32_1 = arith.constant 0 : i32
    return %arg0, %c0_i32, %c0_i32_0 : i32, i32, i32
  }
}

</mosaic_0001>

<bundles_post_ra>
// kernel: tpu_custom_call.1
= control target key start
LH: loop header
LB: loop body
LE: loop exit
PB: predicated region body
PF: predicated region fallthrough
CT: control target
= control target key end

     0   :  { %7 = vsyncpa [#allocation3], 0  ;;  %s270_s0 = inlined_call_operand.hbm [shape: f32[16,128], index: 0, kind: input, shape index: {}]   ;;  %s271_s1 = inlined_call_operand.hbm [shape: f32[16,128], index: 1, kind: input, shape index: {}]   ;;  %s272_s2 = inlined_call_operand.hbm [shape: f32[1,8,128], index: 2, kind: output, shape index: {}]  }
   0x1   :  { %8 = vsyncpa [#allocation6], 0 }
   0x2   :  { %9 = vsyncpa [#allocation4], 0  ;;  %s213_s9 = smov [#allocation2]   ;;  %s141_s13 = scalar_lea.hbm %s270_s0, 256 }
   0x3   :  { %s19_s10 = sshll.u32 %s213_s9, 4  ;;  %p142_p0 = scmp.ne.s32.totalorder %s270_s0, %s141_s13  ;;  %s20_s10 = int_to_ptr.vmem [resolvable:$true] %s19_s10 }
   0x4   :  { %p145_p1 = scmp.lt.u32.totalorder %s141_s13, %s270_s0 }
   0x6   :  { %p147_p2 = pnand %p145_p1, %p142_p0 }
   0x8   :  { %150 = shalt.err (!%p147_p2)
}
   0x9   :  { %s151_s18 = scalar_lea.vmem %s20_s10, 256  ;;  %p156_p4 = scmp.lt.s32.totalorder %s20_s10, %s20_s10 }
   0xa   :  { %p152_p3 = scmp.ne.s32.totalorder %s20_s10, %s151_s18  ;;  %p157_p5 = scmp.lt.s32.totalorder %s151_s18, %s151_s18 }
   0xc   :  { %p158_p6 = por %p157_p5, %p156_p4 }
   0xe   :  { %p159_p7 = pnand %p158_p6, %p152_p3 }
  0x10   :  { %162 = shalt.err (!%p159_p7)
}
  0x11   :  { %s214_s19 = smov 128   ;;  %s215_s20 = smov 8  }
  0x12   :  { %25 = dma.hbm_to_vmem [thread:$0]  %s270_s0, 256, %s20_s10, [#allocation3], %s214_s19, %s214_s19, %s215_s20  }
  0x13   :  { %s216_s23 = smov [#allocation5]   ;;  %s163_s27 = scalar_lea.hbm %s271_s1, 256 }
  0x14   :  { %s35_s24 = sshll.u32 %s216_s23, 4  ;;  %p164_p8 = scmp.ne.s32.totalorder %s271_s1, %s163_s27  ;;  %s36_s24 = int_to_ptr.vmem [resolvable:$true] %s35_s24 }
  0x15   :  { %p167_p9 = scmp.lt.u32.totalorder %s163_s27, %s271_s1 }
  0x17   :  { %p169_p10 = pnand %p167_p9, %p164_p8 }
  0x19   :  { %172 = shalt.err (!%p169_p10)
}
  0x1a   :  { %s173_s4 = scalar_lea.vmem %s36_s24, 256  ;;  %p178_p12 = scmp.lt.s32.totalorder %s36_s24, %s36_s24 }
  0x1b   :  { %p174_p11 = scmp.ne.s32.totalorder %s36_s24, %s173_s4  ;;  %p179_p13 = scmp.lt.s32.totalorder %s173_s4, %s173_s4 }
  0x1d   :  { %p180_p0 = por %p179_p13, %p178_p12 }
  0x1f   :  { %p181_p1 = pnand %p180_p0, %p174_p11 }
  0x21   :  { %184 = shalt.err (!%p181_p1)
}
  0x22   :  { %41 = dma.hbm_to_vmem [thread:$0]  %s271_s1, 256, %s36_s24, [#allocation6], %s214_s19, %s214_s19, %s215_s20  }
  0x23   :  { %207 = dma.done.wait [#allocation3], 256  }
  0x24   :  { %208 = vsyncadd [#allocation3], 4294967040 }
  0x25   :  { %209 = dma.done.wait [#allocation6], 256  }
  0x26   :  { %210 = vsyncadd [#allocation6], 4294967040  ;;  %v57_v0 = vld [vmem:[#allocation2] sm:$0xff]  ;;  %v58_v1 = vld [vmem:[#allocation2 + $0x8] sm:$0xff]  ;;  %v217_v26 = vmov 0.0   ;;  %s218_s1 = smov [#allocation7]  }
  0x27   :  { %v67_v2 = vand.u32 2147483647, %v57_v0  ;;  %v68_v3 = vand.u32 2147483647, %v58_v1  ;;  %v59_v13 = vld [vmem:[#allocation5] sm:$0xff]  ;;  %v60_v15 = vld [vmem:[#allocation5 + $0x8] sm:$0xff] }
  0x28   :  { %v61_v16 = vmax.f32 %v57_v0, 0.0  ;;  %v62_v17 = vmax.f32 %v58_v1, 0.0  ;;  %v63_v18 = vmul.f32 %v59_v13, %v57_v0  ;;  %vm95_vm0 = vcmp.gt.f32.partialorder %v59_v13, 0.5  ;;  %s117_s6 = sshll.u32 %s218_s1, 4  ;;  %s118_s6 = int_to_ptr.vmem [resolvable:$true] %s117_s6 }
  0x29   :  { %v69_v4 = vsub.f32 0.0, %v67_v2  ;;  %v70_v5 = vsub.f32 0.0, %v68_v3  ;;  %vm99_vm1 = vcmp.lt.f32.partialorder %v59_v13, 0.5  ;;  %v64_v22 = vmul.f32 %v60_v15, %v58_v1  ;;  %s185_s7 = scalar_lea.vmem %s118_s6, 128  ;;  %p190_p3 = scmp.lt.s32.totalorder %s118_s6, %s118_s6 }
  0x2a   :  { %vm96_vm2 = vcmp.gt.f32.partialorder %v60_v15, 0.5  ;;  %vm100_vm3 = vcmp.lt.f32.partialorder %v60_v15, 0.5  ;;  %v65_v24 = vsub.f32 %v61_v16, %v63_v18  ;;  %v97_v27 = vsel %vm95_vm0, 0.75, %v217_v26  ;;  %p186_p2 = scmp.ne.s32.totalorder %s118_s6, %s185_s7  ;;  %p191_p4 = scmp.lt.s32.totalorder %s185_s7, %s185_s7 }
  0x2b   :  { %v71_v6 = vmul.f32 1.442695, %v69_v4  ;;  %v73_v7 = vmul.f32 1.442695, %v70_v5  ;;  %v101_v28 = vsel %vm99_vm1, 0.25, %v217_v26  ;;  %v98_v31 = vsel %vm96_vm2, 0.75, %v217_v26 }
  0x2c   :  { %v102_v32 = vsel %vm100_vm3, 0.25, %v217_v26  ;;  %v66_v34 = vsub.f32 %v62_v17, %v64_v22  ;;  %v103_v37 = vadd.f32 %v101_v28, %v97_v27  ;;  %p192_p5 = por %p191_p4, %p190_p3 }
  0x2d   :  { %133 = vpow2.f32 %v71_v6  ;;  %v104_v39 = vadd.f32 %v102_v32, %v98_v31 }
  0x2e   :  { %135 = vpow2.f32 %v73_v7  ;;  %p193_p6 = pnand %p192_p5, %p186_p2 }
  0x37   :  { %v134_v8 = vpop.eup %133 }
  0x38   :  { %v136_v9 = vpop.eup %135  ;;  %v75_v10 = vadd.f32 1.0, %v134_v8  ;;  %v78_v12 = vmul.f32 -0.5, %v134_v8  ;;  %v81_v20 = vand.u32 2147483647, %v134_v8 }
  0x39   :  { %v84_v11 = vadd.f32 1.0, %v136_v9  ;;  %v87_v14 = vmul.f32 -0.5, %v136_v9  ;;  %v90_v23 = vand.u32 2147483647, %v136_v9 }
  0x3a   :  { %137 = vlog2.f32 %v75_v10  ;;  %v79_v19 = vadd.f32 1.0, %v78_v12  ;;  %vm82_vm4 = vcmp.lt.f32.partialorder %v81_v20, 0.0004427343 }
  0x3b   :  { %139 = vlog2.f32 %v84_v11  ;;  %v88_v21 = vadd.f32 1.0, %v87_v14  ;;  %vm91_vm5 = vcmp.lt.f32.partialorder %v90_v23, 0.0004427343 }
  0x3c   :  { %v80_v25 = vmul.f32 %v134_v8, %v79_v19 }
  0x3d   :  { %v89_v30 = vmul.f32 %v136_v9, %v88_v21 }
  0x44   :  { %v138_v29 = vpop.eup %137 }
  0x45   :  { %v140_v33 = vpop.eup %139  ;;  %v77_v35 = vmul.f32 0.6931472, %v138_v29 }
  0x46   :  { %v86_v36 = vmul.f32 0.6931472, %v140_v33 }
  0x47   :  { %v83_v38 = vsel %vm82_vm4, %v80_v25, %v77_v35 }
  0x48   :  { %v92_v40 = vsel %vm91_vm5, %v89_v30, %v86_v36  ;;  %v93_v41 = vadd.f32 %v83_v38, %v65_v24 }
  0x49   :  { %v94_v42 = vadd.f32 %v92_v40, %v66_v34 }
  0x4a   :  { %v105_v43 = vmul.f32 %v103_v37, %v93_v41 }
  0x4b   :  { %v106_v44 = vmul.f32 %v104_v39, %v94_v42 }
  0x4d   :  { %v107_v45 = vadd.f32 %v106_v44, %v105_v43 }
  0x4f   :  { %110 = vst [vmem:[#allocation7] sm:$0xff] %v107_v45 }
  0x50   :  { %196 = shalt.err (!%p193_p6)
}
  0x51   :  { %s197_s10 = scalar_lea.hbm %s272_s2, 128 }
  0x52   :  { %p198_p7 = scmp.ne.s32.totalorder %s272_s2, %s197_s10  ;;  %p201_p8 = scmp.lt.u32.totalorder %s197_s10, %s272_s2 }
  0x54   :  { %p203_p9 = pnand %p201_p8, %p198_p7 }
  0x56   :  { %206 = shalt.err (!%p203_p9)
}
  0x57   :  { %120 = dma.vmem_to_hbm [thread:$0]  %s118_s6, 128, %s272_s2, [#allocation4]  }
  0x58   :  { %211 = dma.done.wait [#allocation4], 128  }
  0x59   :  { %212 = vsyncadd [#allocation4], 4294967168 }
  0x5a   :  { %124 = vsyncpa [#allocation3], 1 }
  0x5b   :  { %125 = vsyncpa [#allocation6], 1 }
  0x5c   :  { %126 = vsyncpa [#allocation4], 1 }

</bundles_post_ra>
